<compile_context>
chip_gen: v5e
topology: v5e:2x2
jax: 0.10.0
libtpu: 0.0.40
codegen_flags: <defaults>
</compile_context>

<pallas_src>
import math
import numpy as np
import jax
import jax.numpy as jnp
from jax import lax
from jax.experimental import pallas as pl
from jax.experimental.pallas import tpu as pltpu


def _i32(x):
    """Python int -> the signed int32 value with the same 32-bit pattern."""
    x &= 0xFFFFFFFF
    return x - 0x100000000 if x >= 0x80000000 else x


_GOLDEN = _i32(0x9E3779B9)     # splitmix-style seed mixing constant
_FMIX_K1 = _i32(0x85EBCA6B)    # murmur3 fmix32 constants
_FMIX_K2 = _i32(0xC2B2AE35)


def _fmix32(h):
    """murmur3 finalizer on int32.

    Arithmetic shift + mask of the low (32-k) bits is bit-identical to a
    logical shift here, so the whole finalizer matches the uint32 reference.
    Integer multiply wraps mod 2^32 in XLA, same as uint32.
    """
    h = h ^ ((h >> 16) & 0xFFFF)
    h = h * _FMIX_K1
    h = h ^ ((h >> 13) & 0x7FFFF)
    h = h * _FMIX_K2
    h = h ^ ((h >> 16) & 0xFFFF)
    return h


def _downsample_kernel(seed_ref, x_ref, inv_ref, o_ref):
    tile_r, width = x_ref.shape                    # static block shape
    # global element index (independent of tiling -> deterministic per seed)
    row = lax.broadcasted_iota(jnp.int32, (tile_r, width), 0)
    col = lax.broadcasted_iota(jnp.int32, (tile_r, width), 1)
    g_row = pl.program_id(0) * tile_r + row
    idx = g_row * width + col

    h = _fmix32(idx + seed_ref[0] * _GOLDEN)       # one 32-bit hash word / elem

    # top 23 bits -> U in [0, 1); bit 0 -> sign in {-1, +1}  (disjoint bits)
    mant = (h >> 9) & 0x7FFFFF
    u = mant.astype(jnp.float32) * jnp.float32(1.0 / (1 << 23))
    sign = (1 - 2 * (h & 1)).astype(jnp.float32)

    # Q = sign * (1 - sqrt(U)) / sidelength[channel]   (channel = lane % d,
    # baked into the (1, width) inv row which broadcasts over sublanes)
    q = sign * (1.0 - jnp.sqrt(u)) * inv_ref[...]
    o_ref[...] = x_ref[...] + q


class ImageDownsamplingPallas:
    """JAX/Pallas re-implementation of ImageDownsampling.forward."""

    _TILE_R_MAX = 512   # <=512 x <=1024 f32 = <=2 MiB/block; in+out double-
                        # buffered <=8 MiB -> safe under default scoped VMEM on
                        # v5e (16 MiB), v6e (32 MiB) and v7x (32 MiB / 64 phys)
    _WIDTH_CAP = 1024   # lane-dense row width target

    def __init__(self, sidelength, downsample=False):
        if isinstance(sidelength, int):
            sidelength = (sidelength, sidelength)
        if sidelength is not None:
            self.sidelength = np.asarray(sidelength, dtype=np.float32)
        else:
            assert downsample is False
            self.sidelength = None
        self.downsample = downsample

    def __call__(self, coords, seed=0):
        if not self.downsample:
            return jnp.asarray(coords)              # exact identity, keeps dtype

        coords = jnp.asarray(coords, jnp.float32)
        d = coords.shape[-1]
        assert self.sidelength.shape[0] == d, (self.sidelength.shape, d)
        orig_shape = coords.shape
        total = int(np.prod(orig_shape))

        # lane-dense 2-D fold: rows of width C, C a multiple of 128 (lane) and
        # of d (channel period) so the per-channel 1/side pattern repeats per row.
        c_unit = (128 * d) // math.gcd(128, d)      # lcm(128, d)
        width_cap = max(self._WIDTH_CAP, c_unit)

        # prefer a width that divides `total` exactly -> no tail pad / slice
        width = 0
        for m in range(width_cap // c_unit, 0, -1):
            if total % (m * c_unit) == 0:
                width = m * c_unit
                break
        padded = width == 0
        if padded:
            # TODO(synk): pad fallback costs one extra HBM pass; only taken when
            # the flat size shares no lane-dense divisor with lcm(128, d).
            width = c_unit * max(1, self._WIDTH_CAP // c_unit)

        rows = pl.cdiv(total, width)
        padded_total = rows * width

        flat = coords.reshape(-1)
        if padded:
            flat = jnp.pad(flat, (0, padded_total - total))
        x2d = flat.reshape(rows, width)

        # per-lane 1/sidelength row (channel index = flat index % d)
        inv_row = jnp.asarray(
            np.tile(1.0 / self.sidelength, width // d)[None, :], dtype=jnp.float32)

        # tile_r: multiple of 8 (or == rows).  Cap so the 1-D "parallel" grid
        # has >= 2 steps once rows > 16, so v7x's two TensorCores both get work;
        # extra grid steps cost ~0.35 us each on single-TC chips (negligible).
        if rows <= 16:
            tile_r = rows
        else:
            half = (((rows + 1) // 2) + 7) // 8 * 8
            tile_r = min(self._TILE_R_MAX, half)
        grid_r = pl.cdiv(rows, tile_r)

        seed_arr = jnp.asarray([seed], dtype=jnp.int32)

        out2d = pl.pallas_call(
            _downsample_kernel,
            out_shape=jax.ShapeDtypeStruct((rows, width), jnp.float32),
            grid_spec=pltpu.PrefetchScalarGridSpec(
                num_scalar_prefetch=1,
                grid=(grid_r,),
                in_specs=[
                    pl.BlockSpec((tile_r, width), lambda i, seed: (i, 0)),
                    pl.BlockSpec((1, width), lambda i, seed: (0, 0)),
                ],
                out_specs=pl.BlockSpec((tile_r, width), lambda i, seed: (i, 0)),
            ),
            compiler_params=pltpu.CompilerParams(
                dimension_semantics=("parallel",)),
        )(seed_arr, x2d, inv_row)

        out_flat = out2d.reshape(-1)
        if padded:
            out_flat = out_flat[:total]
        return out_flat.reshape(orig_shape)


if __name__ == "__main__":
    key = jax.random.PRNGKey(0)
    # coords in the u,v plane: (batch=2, n_points=512, 2) in [-1, 1]
    B, N, D = 2, 512, 2
    coords = jax.random.uniform(key, (B, N, D), dtype=jnp.float32,
                                minval=-1.0, maxval=1.0)
    sidelength = (16, 16)

    # downsample=False path: exact identity
    ident = ImageDownsamplingPallas(sidelength, downsample=False)
    out0 = jax.block_until_ready(ident(coords))
    np.testing.assert_array_equal(np.asarray(out0), np.asarray(coords))

    # downsample=True path: coords + bilinear-blur jitter (runs the kernel)
    mod = ImageDownsamplingPallas(sidelength, downsample=True)
    out = jax.block_until_ready(mod(coords, seed=0))
    assert out.shape == coords.shape, out.shape

    # structural / distributional checks (output is stochastic by design)
    q = (np.asarray(out) - np.asarray(coords)) * np.asarray(mod.sidelength)
    assert np.all(np.isfinite(q))
    assert q.min() >= -1.0 - 1e-5 and q.max() <= 1.0 + 1e-5   # support of Q*side
    assert (q < 0).any() and (q > 0).any()                    # both signs hit
    assert abs(float(q.mean())) < 0.1                         # symmetric around 0

    # exercise the (rare) non-divisible pad fallback at a tiny odd size
    small = jax.random.uniform(jax.random.PRNGKey(1), (3, 7, 2),
                               dtype=jnp.float32, minval=-1.0, maxval=1.0)
    out_small = jax.block_until_ready(mod(small, seed=3))
    assert out_small.shape == small.shape
    qs = (np.asarray(out_small) - np.asarray(small)) * np.asarray(mod.sidelength)
    assert np.all(np.isfinite(qs)) and qs.min() >= -1.0 - 1e-5 and qs.max() <= 1.0 + 1e-5

    print("KERNEL_OK")
</pallas_src>

<mosaic_0001>
module attributes {stable_mosaic.version = 11 : i64} {
  func.func @_downsample_kernel(%arg0: i32, %arg1: memref<1xi32, #tpu.memory_space<smem>>, %arg2: memref<2x1024xf32, #tpu.memory_space<vmem>>, %arg3: memref<1x1024xf32, #tpu.memory_space<vmem>>, %arg4: memref<2x1024xf32, #tpu.memory_space<vmem>>) attributes {dimension_semantics = [#tpu.dimension_semantics<parallel>], iteration_bounds = array<i64: 1>, scalar_prefetch = 1 : i64, scratch_operands = 0 : i64, tpu.core_type = #tpu.core_type<tc>, window_params = [{transform_indices = @transform_0, window_bounds = array<i64: 2, 1024>}, {pipeline_mode = #tpu.pipeline_mode<synchronous>, transform_indices = @transform_1, window_bounds = array<i64: 1, 1024>}, {transform_indices = @transform_2, window_bounds = array<i64: 2, 1024>}]} {
    %0 = tpu.iota {dimensions = array<i32: 0>} : vector<2x1024xi32>
    %1 = tpu.iota {dimensions = array<i32: 1>} : vector<2x1024xi32>
    %c2_i32 = arith.constant 2 : i32
    %2 = arith.muli %arg0, %c2_i32 : i32
    %3 = vector.broadcast %2 : i32 to vector<2x1024xi32>
    %4 = arith.addi %3, %0 : vector<2x1024xi32>
    %c1024_i32 = arith.constant 1024 : i32
    %5 = vector.broadcast %c1024_i32 : i32 to vector<2x1024xi32>
    %6 = arith.muli %4, %5 : vector<2x1024xi32>
    %7 = arith.addi %6, %1 : vector<2x1024xi32>
    %c0 = arith.constant 0 : index
    %8 = memref.load %arg1[%c0] : memref<1xi32, #tpu.memory_space<smem>>
    %c-1640531527_i32 = arith.constant -1640531527 : i32
    %9 = arith.muli %8, %c-1640531527_i32 : i32
    %10 = vector.broadcast %9 : i32 to vector<2x1024xi32>
    %11 = arith.addi %7, %10 : vector<2x1024xi32>
    %c16_i32 = arith.constant 16 : i32
    %12 = vector.broadcast %c16_i32 : i32 to vector<2x1024xi32>
    %13 = arith.shrsi %11, %12 : vector<2x1024xi32>
    %c65535_i32 = arith.constant 65535 : i32
    %14 = vector.broadcast %c65535_i32 : i32 to vector<2x1024xi32>
    %15 = arith.andi %13, %14 : vector<2x1024xi32>
    %16 = arith.xori %11, %15 : vector<2x1024xi32>
    %c-2048144789_i32 = arith.constant -2048144789 : i32
    %17 = vector.broadcast %c-2048144789_i32 : i32 to vector<2x1024xi32>
    %18 = arith.muli %16, %17 : vector<2x1024xi32>
    %c13_i32 = arith.constant 13 : i32
    %19 = vector.broadcast %c13_i32 : i32 to vector<2x1024xi32>
    %20 = arith.shrsi %18, %19 : vector<2x1024xi32>
    %c524287_i32 = arith.constant 524287 : i32
    %21 = vector.broadcast %c524287_i32 : i32 to vector<2x1024xi32>
    %22 = arith.andi %20, %21 : vector<2x1024xi32>
    %23 = arith.xori %18, %22 : vector<2x1024xi32>
    %c-1028477387_i32 = arith.constant -1028477387 : i32
    %24 = vector.broadcast %c-1028477387_i32 : i32 to vector<2x1024xi32>
    %25 = arith.muli %23, %24 : vector<2x1024xi32>
    %c16_i32_0 = arith.constant 16 : i32
    %26 = vector.broadcast %c16_i32_0 : i32 to vector<2x1024xi32>
    %27 = arith.shrsi %25, %26 : vector<2x1024xi32>
    %c65535_i32_1 = arith.constant 65535 : i32
    %28 = vector.broadcast %c65535_i32_1 : i32 to vector<2x1024xi32>
    %29 = arith.andi %27, %28 : vector<2x1024xi32>
    %30 = arith.xori %25, %29 : vector<2x1024xi32>
    %c9_i32 = arith.constant 9 : i32
    %31 = vector.broadcast %c9_i32 : i32 to vector<2x1024xi32>
    %32 = arith.shrsi %30, %31 : vector<2x1024xi32>
    %c8388607_i32 = arith.constant 8388607 : i32
    %33 = vector.broadcast %c8388607_i32 : i32 to vector<2x1024xi32>
    %34 = arith.andi %32, %33 : vector<2x1024xi32>
    %35 = arith.sitofp %34 : vector<2x1024xi32> to vector<2x1024xf32>
    %cst = arith.constant 1.1920929E-7 : f32
    %36 = vector.broadcast %cst : f32 to vector<2x1024xf32>
    %37 = arith.mulf %35, %36 : vector<2x1024xf32>
    %c1_i32 = arith.constant 1 : i32
    %38 = vector.broadcast %c1_i32 : i32 to vector<2x1024xi32>
    %39 = arith.andi %30, %38 : vector<2x1024xi32>
    %c2_i32_2 = arith.constant 2 : i32
    %40 = vector.broadcast %c2_i32_2 : i32 to vector<2x1024xi32>
    %41 = arith.muli %40, %39 : vector<2x1024xi32>
    %c1_i32_3 = arith.constant 1 : i32
    %42 = vector.broadcast %c1_i32_3 : i32 to vector<2x1024xi32>
    %43 = arith.subi %42, %41 : vector<2x1024xi32>
    %44 = arith.sitofp %43 : vector<2x1024xi32> to vector<2x1024xf32>
    %45 = math.sqrt %37 : vector<2x1024xf32>
    %cst_4 = arith.constant 1.000000e+00 : f32
    %46 = vector.broadcast %cst_4 : f32 to vector<2x1024xf32>
    %47 = arith.subf %46, %45 : vector<2x1024xf32>
    %48 = arith.mulf %44, %47 : vector<2x1024xf32>
    %c0_5 = arith.constant 0 : index
    %c0_6 = arith.constant 0 : index
    %49 = vector.load %arg3[%c0_5, %c0_6] : memref<1x1024xf32, #tpu.memory_space<vmem>>, vector<1x1024xf32>
    %50 = vector.broadcast %49 : vector<1x1024xf32> to vector<2x1024xf32>
    %51 = arith.mulf %48, %50 : vector<2x1024xf32>
    %c0_7 = arith.constant 0 : index
    %c0_8 = arith.constant 0 : index
    %52 = vector.load %arg2[%c0_7, %c0_8] : memref<2x1024xf32, #tpu.memory_space<vmem>>, vector<2x1024xf32>
    %53 = arith.addf %52, %51 : vector<2x1024xf32>
    %c0_9 = arith.constant 0 : index
    %c0_10 = arith.constant 0 : index
    %54 = vector.load %arg4[%c0_9, %c0_10] : memref<2x1024xf32, #tpu.memory_space<vmem>>, vector<2x1024xf32>
    tpu.vector_store %arg4[%c0_9, %c0_10], %53 {strides = array<i32>} : memref<2x1024xf32, #tpu.memory_space<vmem>>, vector<2x1024xf32>,
    return
  }
  func.func @transform_0(%arg0: i32, %arg1: memref<1xi32, #tpu.memory_space<smem>>) -> (i32, i32) {
    %c0_i32 = arith.constant 0 : i32
    %c0_i32_0 = arith.constant 0 : i32
    return %arg0, %c0_i32 : i32, i32
  }
  func.func @transform_1(%arg0: i32, %arg1: memref<1xi32, #tpu.memory_space<smem>>) -> (i32, i32) {
    %c0_i32 = arith.constant 0 : i32
    %c0_i32_0 = arith.constant 0 : i32
    %c0_i32_1 = arith.constant 0 : i32
    return %c0_i32, %c0_i32_0 : i32, i32
  }
  func.func @transform_2(%arg0: i32, %arg1: memref<1xi32, #tpu.memory_space<smem>>) -> (i32, i32) {
    %c0_i32 = arith.constant 0 : i32
    %c0_i32_0 = arith.constant 0 : i32
    return %arg0, %c0_i32 : i32, i32
  }
}

</mosaic_0001>

<bundles_post_ra>
// kernel: tpu_custom_call.1
= control target key start
LH: loop header
LB: loop body
LE: loop exit
PB: predicated region body
PF: predicated region fallthrough
CT: control target
= control target key end

     0   :  { %9 = vsyncpa [#allocation5], 0  ;;  %s751_s0 = inlined_call_operand.<no memory space> [shape: s32[1], index: 0, kind: input, shape index: {}]   ;;  %s752_s1 = inlined_call_operand.hbm [shape: f32[2,1024], index: 1, kind: input, shape index: {}]   ;;  %s753_s2 = inlined_call_operand.hbm [shape: f32[1,1024], index: 2, kind: input, shape index: {}]   ;;  %s754_s3 = inlined_call_operand.hbm [shape: f32[2,1024], index: 3, kind: output, shape index: {}]  }
   0x1   :  { %10 = vsyncpa [#allocation8], 0 }
   0x2   :  { %11 = vsyncpa [#allocation6], 0  ;;  %s17_s14 = sshll.u32 %s752_s1, 4  ;;  %s544_s15 = smov [#allocation4]   ;;  %s18_s14 = int_to_ptr.hbm [resolvable:$true] %s17_s14 }
   0x3   :  { %s19_s16 = sshll.u32 %s544_s15, 4  ;;  %s28_s19 = sshll.u32 %s753_s2, 4  ;;  %s20_s16 = int_to_ptr.vmem [resolvable:$true] %s19_s16  ;;  %s29_s19 = int_to_ptr.hbm [resolvable:$true] %s28_s19 }
   0x4   :  { %22 = dma.hbm_to_vmem [thread:$0]  %s18_s14, 256, %s20_s16, [#allocation5]  }
   0x5   :  { %s545_s20 = smov [#allocation7]  }
   0x6   :  { %s30_s21 = sshll.u32 %s545_s20, 4  ;;  %s31_s21 = int_to_ptr.vmem [resolvable:$true] %s30_s21 }
   0x7   :  { %33 = dma.hbm_to_vmem [thread:$0]  %s29_s19, 128, %s31_s21, [#allocation8]  }
   0x8   :  { %538 = dma.done.wait [#allocation5], 256  }
   0x9   :  { %539 = vsyncadd [#allocation5], 4294967040 }
   0xa   :  { %540 = dma.done.wait [#allocation8], 128  }
   0xb   :  { %541 = vsyncadd [#allocation8], 4294967168  ;;  %v42_v0 = vlaneseq  ;;  %s66_s23 = smul.u32 2654435769, %s751_s0  ;;  %s546_s0 = smov [#allocation9]  }
   0xc   :  { %s402_s2 = sshll.u32 %s546_s0, 4  ;;  %s404_s26 = sshll.u32 %s754_s3, 4  ;;  %s403_s2 = int_to_ptr.vmem [resolvable:$true] %s402_s2  ;;  %s405_s26 = int_to_ptr.hbm [resolvable:$true] %s404_s26 }
   0xd   :  { %v43_v1 = vshrl.u32 %v42_v0, 7  ;;  %v45_v2 = vand.u32 127, %v42_v0  ;;  %v67_v11 = vstv %s66_s23 }
   0xf   :  { %v46_v3 = vadd.s32 128, %v45_v2  ;;  %v47_v4 = vadd.s32 256, %v45_v2  ;;  %v48_v5 = vadd.s32 384, %v45_v2  ;;  %v49_v6 = vadd.s32 512, %v45_v2 }
  0x10   :  { %v50_v7 = vadd.s32 640, %v45_v2  ;;  %v51_v8 = vadd.s32 768, %v45_v2  ;;  %v52_v9 = vadd.s32 896, %v45_v2  ;;  %v56_v10 = vmul.u32 1024, %v43_v1 }
  0x12   :  { %v57_v12 = vadd.s32 %v56_v10, %v45_v2  ;;  %v58_v13 = vadd.s32 %v56_v10, %v46_v3  ;;  %v59_v14 = vadd.s32 %v56_v10, %v47_v4  ;;  %v60_v15 = vadd.s32 %v56_v10, %v48_v5 }
  0x13   :  { %v61_v16 = vadd.s32 %v56_v10, %v49_v6  ;;  %v62_v17 = vadd.s32 %v56_v10, %v50_v7  ;;  %v63_v18 = vadd.s32 %v56_v10, %v51_v8  ;;  %v64_v19 = vadd.s32 %v56_v10, %v52_v9 }
  0x14   :  { %v68_v20 = vadd.s32 %v67_v11, %v57_v12  ;;  %v69_v21 = vadd.s32 %v67_v11, %v58_v13  ;;  %v70_v22 = vadd.s32 %v67_v11, %v59_v14  ;;  %v71_v23 = vadd.s32 %v67_v11, %v60_v15 }
  0x15   :  { %v72_v24 = vadd.s32 %v67_v11, %v61_v16  ;;  %v73_v25 = vadd.s32 %v67_v11, %v62_v17  ;;  %v74_v26 = vadd.s32 %v67_v11, %v63_v18  ;;  %v75_v27 = vadd.s32 %v67_v11, %v64_v19 }
  0x16   :  { %v415_v28 = vshrl.u32 %v68_v20, 16  ;;  %v416_v29 = vshrl.u32 %v69_v21, 16  ;;  %v417_v30 = vshrl.u32 %v70_v22, 16  ;;  %v418_v31 = vshrl.u32 %v71_v23, 16 }
  0x17   :  { %v419_v32 = vshrl.u32 %v72_v24, 16  ;;  %v420_v33 = vshrl.u32 %v73_v25, 16  ;;  %v421_v34 = vshrl.u32 %v74_v26, 16  ;;  %v422_v35 = vshrl.u32 %v75_v27, 16 }
  0x18   :  { %v92_v36 = vxor.u32 %v415_v28, %v68_v20  ;;  %v93_v37 = vxor.u32 %v416_v29, %v69_v21  ;;  %v94_v38 = vxor.u32 %v417_v30, %v70_v22  ;;  %v95_v39 = vxor.u32 %v418_v31, %v71_v23 }
  0x19   :  { %v96_v40 = vxor.u32 %v419_v32, %v72_v24  ;;  %v97_v41 = vxor.u32 %v420_v33, %v73_v25  ;;  %v98_v42 = vxor.u32 %v421_v34, %v74_v26  ;;  %v99_v43 = vxor.u32 %v422_v35, %v75_v27 }
  0x1a   :  { %v100_v44 = vmul.u32 2246822507, %v92_v36  ;;  %v101_v45 = vmul.u32 2246822507, %v93_v37  ;;  %v102_v46 = vmul.u32 2246822507, %v94_v38 }
  0x1b   :  { %v103_v47 = vmul.u32 2246822507, %v95_v39  ;;  %v104_v48 = vmul.u32 2246822507, %v96_v40  ;;  %v105_v49 = vmul.u32 2246822507, %v97_v41 }
  0x1c   :  { %v106_v50 = vmul.u32 2246822507, %v98_v42  ;;  %v107_v51 = vmul.u32 2246822507, %v99_v43  ;;  %v423_v52 = vshrl.u32 %v100_v44, 13  ;;  %v424_v53 = vshrl.u32 %v101_v45, 13 }
  0x1d   :  { %v425_v54 = vshrl.u32 %v102_v46, 13  ;;  %v426_v55 = vshrl.u32 %v103_v47, 13  ;;  %v427_v56 = vshrl.u32 %v104_v48, 13  ;;  %v428_v57 = vshrl.u32 %v105_v49, 13 }
  0x1e   :  { %v429_v58 = vshrl.u32 %v106_v50, 13  ;;  %v430_v59 = vshrl.u32 %v107_v51, 13  ;;  %v124_v60 = vxor.u32 %v423_v52, %v100_v44  ;;  %v125_v61 = vxor.u32 %v424_v53, %v101_v45 }
  0x1f   :  { %v126_v62 = vxor.u32 %v425_v54, %v102_v46  ;;  %v127_v63 = vxor.u32 %v426_v55, %v103_v47  ;;  %v128_v0 = vxor.u32 %v427_v56, %v104_v48  ;;  %v129_v1 = vxor.u32 %v428_v57, %v105_v49 }
  0x20   :  { %v130_v2 = vxor.u32 %v429_v58, %v106_v50  ;;  %v131_v3 = vxor.u32 %v430_v59, %v107_v51  ;;  %v132_v4 = vmul.u32 3266489909, %v124_v60  ;;  %v133_v5 = vmul.u32 3266489909, %v125_v61 }
  0x21   :  { %v134_v6 = vmul.u32 3266489909, %v126_v62  ;;  %v135_v7 = vmul.u32 3266489909, %v127_v63  ;;  %v136_v8 = vmul.u32 3266489909, %v128_v0 }
  0x22   :  { %v137_v9 = vmul.u32 3266489909, %v129_v1  ;;  %v138_v10 = vmul.u32 3266489909, %v130_v2  ;;  %v139_v11 = vmul.u32 3266489909, %v131_v3 }
  0x23   :  { %v431_v12 = vshrl.u32 %v132_v4, 16  ;;  %v432_v13 = vshrl.u32 %v133_v5, 16  ;;  %v433_v14 = vshrl.u32 %v134_v6, 16  ;;  %v434_v15 = vshrl.u32 %v135_v7, 16 }
  0x24   :  { %v435_v16 = vshrl.u32 %v136_v8, 16  ;;  %v436_v17 = vshrl.u32 %v137_v9, 16  ;;  %v437_v18 = vshrl.u32 %v138_v10, 16  ;;  %v438_v21 = vshrl.u32 %v139_v11, 16 }
  0x25   :  { %v156_v19 = vxor.u32 %v431_v12, %v132_v4  ;;  %v157_v20 = vxor.u32 %v432_v13, %v133_v5  ;;  %v158_v22 = vxor.u32 %v433_v14, %v134_v6  ;;  %v159_v23 = vxor.u32 %v434_v15, %v135_v7 }
  0x26   :  { %v160_v24 = vxor.u32 %v435_v16, %v136_v8  ;;  %v161_v25 = vxor.u32 %v436_v17, %v137_v9  ;;  %v162_v26 = vxor.u32 %v437_v18, %v138_v10  ;;  %v163_v29 = vxor.u32 %v438_v21, %v139_v11 }
  0x27   :  { %v439_v27 = vshrl.u32 %v156_v19, 9  ;;  %v440_v28 = vshrl.u32 %v157_v20, 9  ;;  %v441_v30 = vshrl.u32 %v158_v22, 9  ;;  %v442_v31 = vshrl.u32 %v159_v23, 9 }
  0x28   :  { %v443_v32 = vshrl.u32 %v160_v24, 9  ;;  %v444_v33 = vshrl.u32 %v161_v25, 9  ;;  %v445_v34 = vshrl.u32 %v162_v26, 9  ;;  %v196_v37 = vand.u32 1, %v156_v19 }
  0x29   :  { %v180_v35 = vcvt.s32.f32 %v439_v27  ;;  %v181_v36 = vcvt.s32.f32 %v440_v28  ;;  %v197_v38 = vand.u32 1, %v157_v20  ;;  %v198_v39 = vand.u32 1, %v158_v22  ;;  %v616_v22 = vld [vmem:[#allocation7] sm:$0xff] }
  0x2a   :  { %v199_v40 = vand.u32 1, %v159_v23  ;;  %v200_v41 = vand.u32 1, %v160_v24  ;;  %v201_v42 = vand.u32 1, %v161_v25  ;;  %v202_v43 = vand.u32 1, %v162_v26 }
  0x2b   :  { %v203_v44 = vand.u32 1, %v163_v29  ;;  %v446_v45 = vshrl.u32 %v163_v29, 9  ;;  %v182_v46 = vcvt.s32.f32 %v441_v30  ;;  %v183_v47 = vcvt.s32.f32 %v442_v31 }
  0x2c   :  { %v204_v48 = vmul.u32 2, %v196_v37  ;;  %v184_v49 = vcvt.s32.f32 %v443_v32  ;;  %v205_v50 = vmul.u32 2, %v197_v38  ;;  %v206_v51 = vmul.u32 2, %v198_v39 }
  0x2d   :  { %v207_v52 = vmul.u32 2, %v199_v40  ;;  %v576_v53 = vmul.f32 1.1920929e-07, %v180_v35  ;;  %v208_v54 = vmul.u32 2, %v200_v41  ;;  %v209_v55 = vmul.u32 2, %v201_v42 }
  0x2e   :  { %v210_v56 = vmul.u32 2, %v202_v43  ;;  %v185_v57 = vcvt.s32.f32 %v444_v33  ;;  %v186_v58 = vcvt.s32.f32 %v445_v34  ;;  %v578_v59 = vmul.f32 1.1920929e-07, %v181_v36 }
  0x2f   :  { %v211_v60 = vmul.u32 2, %v203_v44  ;;  %v187_v61 = vcvt.s32.f32 %v446_v45  ;;  %v580_v62 = vmul.f32 1.1920929e-07, %v182_v46  ;;  %v582_v63 = vmul.f32 1.1920929e-07, %v183_v47 }
  0x30   :  { %v212_v0 = vsub.s32 1, %v204_v48  ;;  %v584_v1 = vmul.f32 1.1920929e-07, %v184_v49  ;;  %v213_v2 = vsub.s32 1, %v205_v50  ;;  %v214_v3 = vsub.s32 1, %v206_v51 }
  0x31   :  { %v215_v4 = vsub.s32 1, %v207_v52  ;;  %v216_v5 = vsub.s32 1, %v208_v54  ;;  %v217_v6 = vsub.s32 1, %v209_v55  ;;  %v218_v7 = vsub.s32 1, %v210_v56 }
  0x32   :  { %450 = vrsqrt.f32 %v576_v53  ;;  %v587_v8 = vmul.f32 1.1920929e-07, %v185_v57  ;;  %v219_v9 = vsub.s32 1, %v211_v60  ;;  %v590_v10 = vmul.f32 1.1920929e-07, %v186_v58 }
  0x33   :  { %452 = vrsqrt.f32 %v578_v59  ;;  %v592_v11 = vmul.f32 1.1920929e-07, %v187_v61  ;;  %v594_v12 = vcvt.s32.f32 %v212_v0  ;;  %v597_v13 = vcvt.s32.f32 %v213_v2 }
  0x34   :  { %454 = vrsqrt.f32 %v580_v62  ;;  %v599_v14 = vcvt.s32.f32 %v214_v3  ;;  %v601_v15 = vcvt.s32.f32 %v215_v4  ;;  %v604_v16 = vcvt.s32.f32 %v216_v5 }
  0x35   :  { %456 = vrsqrt.f32 %v582_v63  ;;  %v606_v17 = vcvt.s32.f32 %v217_v6  ;;  %v608_v18 = vcvt.s32.f32 %v218_v7  ;;  %v611_v19 = vcvt.s32.f32 %v219_v9 }
  0x36   :  { %458 = vrsqrt.f32 %v584_v1  ;;  %v238_v20 = vand.u32 2147483648, %v576_v53  ;;  %v250_v21 = vand.u32 2147483648, %v578_v59  ;;  %v262_v24 = vand.u32 2147483648, %v580_v62 }
  0x37   :  { %460 = vrsqrt.f32 %v587_v8  ;;  %v274_v25 = vand.u32 2147483648, %v582_v63  ;;  %v286_v26 = vand.u32 2147483648, %v584_v1  ;;  %v298_v29 = vand.u32 2147483648, %v587_v8 }
  0x38   :  { %v451_v23 = vpop.eup %450  ;;  %462 = vrsqrt.f32 %v590_v10  ;;  %v310_v30 = vand.u32 2147483648, %v590_v10  ;;  %vm235_vm0 = vcmp.eq.f32.partialorder %v576_v53, inf  ;;  %v322_v33 = vand.u32 2147483648, %v592_v11 }
  0x39   :  { %v453_v27 = vpop.eup %452  ;;  %v229_v28 = vmul.f32 %v451_v23, %v576_v53  ;;  %464 = vrsqrt.f32 %v592_v11  ;;  %v342_v34 = vperm.slane %v616_v22, 0  ;;  %v343_v35 = vperm.slane %v616_v22, 1 }
  0x3a   :  { %v455_v31 = vpop.eup %454  ;;  %v241_v32 = vmul.f32 %v453_v27, %v578_v59  ;;  %vm237_vm1 = vcmp.eq.f32.partialorder %v576_v53, 0.0  ;;  %vm247_vm2 = vcmp.eq.f32.partialorder %v578_v59, inf  ;;  %v344_v39 = vperm.slane %v616_v22, 2 }
  0x3b   :  { %v457_v36 = vpop.eup %456  ;;  %v230_v37 = vmul.f32 %v451_v23, %v229_v28  ;;  %v253_v38 = vmul.f32 %v455_v31, %v580_v62  ;;  %v345_v40 = vperm.slane %v616_v22, 3  ;;  %vm249_vm3 = vcmp.eq.f32.partialorder %v578_v59, 0.0 }
  0x3c   :  { %v459_v41 = vpop.eup %458  ;;  %v242_v42 = vmul.f32 %v453_v27, %v241_v32  ;;  %vm259_vm4 = vcmp.eq.f32.partialorder %v580_v62, inf  ;;  %v265_v43 = vmul.f32 %v457_v36, %v582_v63  ;;  %v346_v44 = vperm.slane %v616_v22, 4 }
  0x3d   :  { %v347_v45 = vperm.slane %v616_v22, 5  ;;  %v461_v46 = vpop.eup %460  ;;  %v231_v47 = vmul.f32 0.5, %v230_v37  ;;  %v254_v48 = vmul.f32 %v455_v31, %v253_v38  ;;  %vm261_vm5 = vcmp.eq.f32.partialorder %v580_v62, 0.0 }
  0x3e   :  { %vm271_vm6 = vcmp.eq.f32.partialorder %v582_v63, inf  ;;  %v277_v49 = vmul.f32 %v459_v41, %v584_v1  ;;  %v348_v50 = vperm.slane %v616_v22, 6  ;;  %v463_v51 = vpop.eup %462  ;;  %v243_v52 = vmul.f32 0.5, %v242_v42 }
  0x3f   :  { %v266_v54 = vmul.f32 %v457_v36, %v265_v43  ;;  %vm273_vm7 = vcmp.eq.f32.partialorder %v582_v63, 0.0  ;;  %vm283_vm8 = vcmp.eq.f32.partialorder %v584_v1, inf  ;;  %v289_v55 = vmul.f32 %v461_v46, %v587_v8  ;;  %v465_v57 = vpop.eup %464 }
  0x40   :  { %v349_v56 = vperm.slane %v616_v22, 7  ;;  %v232_v58 = vsub.f32 1.5, %v231_v47  ;;  %v255_v60 = vmul.f32 0.5, %v254_v48  ;;  %v278_v61 = vmul.f32 %v459_v41, %v277_v49 }
  0x41   :  { %vm285_vm9 = vcmp.eq.f32.partialorder %v584_v1, 0.0  ;;  %vm295_vm10 = vcmp.eq.f32.partialorder %v587_v8, inf  ;;  %v301_v0 = vmul.f32 %v463_v51, %v590_v10  ;;  %v244_v2 = vsub.f32 1.5, %v243_v52 }
  0x42   :  { %v267_v3 = vmul.f32 0.5, %v266_v54  ;;  %v290_v4 = vmul.f32 %v461_v46, %v289_v55  ;;  %vm297_vm11 = vcmp.eq.f32.partialorder %v587_v8, 0.0  ;;  %vm307_vm12 = vcmp.eq.f32.partialorder %v590_v10, inf }
  0x43   :  { %v313_v5 = vmul.f32 %v465_v57, %v592_v11  ;;  %v233_v6 = vmul.f32 %v451_v23, %v232_v58  ;;  %v256_v7 = vsub.f32 1.5, %v255_v60  ;;  %v279_v9 = vmul.f32 0.5, %v278_v61 }
  0x44   :  { %v302_v28 = vmul.f32 %v463_v51, %v301_v0  ;;  %vm309_vm13 = vcmp.eq.f32.partialorder %v590_v10, 0.0  ;;  %v245_v32 = vmul.f32 %v453_v27, %v244_v2  ;;  %v268_v37 = vsub.f32 1.5, %v267_v3 }
  0x45   :  { %v291_v38 = vmul.f32 0.5, %v290_v4  ;;  %v314_v42 = vmul.f32 %v465_v57, %v313_v5  ;;  %v234_v43 = vmul.f32 %v233_v6, %v576_v53  ;;  %v257_v47 = vmul.f32 %v455_v31, %v256_v7 }
  0x46   :  { %v280_v48 = vsub.f32 1.5, %v279_v9  ;;  %v303_v49 = vmul.f32 0.5, %v302_v28  ;;  %vm319_vm14 = vcmp.eq.f32.partialorder %v592_v11, inf  ;;  %v246_v52 = vmul.f32 %v245_v32, %v578_v59 }
  0x47   :  { %v269_v54 = vmul.f32 %v457_v36, %v268_v37  ;;  %v292_v23 = vsub.f32 1.5, %v291_v38  ;;  %v315_v55 = vmul.f32 0.5, %v314_v42  ;;  %vm321_vm15 = vcmp.eq.f32.partialorder %v592_v11, 0.0 }
  0x48   :  { %v236_v27 = vsel %vm235_vm0, %v576_v53, %v234_v43  ;;  %v258_v58 = vmul.f32 %v257_v47, %v580_v62  ;;  %v281_v60 = vmul.f32 %v459_v41, %v280_v48  ;;  %v304_v61 = vsub.f32 1.5, %v303_v49 }
  0x49   :  { %v239_v31 = vsel %vm237_vm1, %v238_v20, %v236_v27  ;;  %v248_v36 = vsel %vm247_vm2, %v578_v59, %v246_v52  ;;  %v270_v0 = vmul.f32 %v269_v54, %v582_v63  ;;  %v293_v2 = vmul.f32 %v461_v46, %v292_v23 }
  0x4a   :  { %v251_v3 = vsel %vm249_vm3, %v250_v21, %v248_v36  ;;  %v260_v41 = vsel %vm259_vm4, %v580_v62, %v258_v58  ;;  %v282_v4 = vmul.f32 %v281_v60, %v584_v1  ;;  %v305_v53 = vmul.f32 %v463_v51, %v304_v61  ;;  %v367_v61 = vld [vmem:[#allocation4 + $0x8] sm:$0xff] }
  0x4b   :  { %v263_v20 = vsel %vm261_vm5, %v262_v24, %v260_v41  ;;  %v272_v46 = vsel %vm271_vm6, %v582_v63, %v270_v0  ;;  %v294_v5 = vmul.f32 %v293_v2, %v587_v8  ;;  %v316_v59 = vsub.f32 1.5, %v315_v55 }
  0x4c   :  { %v275_v21 = vsel %vm273_vm7, %v274_v25, %v272_v46  ;;  %v284_v51 = vsel %vm283_vm8, %v584_v1, %v282_v4  ;;  %v306_v6 = vmul.f32 %v305_v53, %v590_v10  ;;  %v324_v62 = vsub.f32 1.0, %v239_v31 }
  0x4d   :  { %v287_v24 = vsel %vm285_vm9, %v286_v26, %v284_v51  ;;  %v296_v7 = vsel %vm295_vm10, %v587_v8, %v294_v5  ;;  %v317_v9 = vmul.f32 %v465_v57, %v316_v59  ;;  %v325_v28 = vsub.f32 1.0, %v251_v3 }
  0x4e   :  { %v299_v63 = vsel %vm297_vm11, %v298_v29, %v296_v7  ;;  %v308_v25 = vsel %vm307_vm12, %v590_v10, %v306_v6  ;;  %v326_v32 = vsub.f32 1.0, %v263_v20  ;;  %v327_v37 = vsub.f32 1.0, %v275_v21 }
  0x4f   :  { %v311_v1 = vsel %vm309_vm13, %v310_v30, %v308_v25  ;;  %v318_v26 = vmul.f32 %v317_v9, %v592_v11  ;;  %v328_v57 = vsub.f32 1.0, %v287_v24  ;;  %v329_v38 = vsub.f32 1.0, %v299_v63 }
  0x50   :  { %v330_v42 = vsub.f32 1.0, %v311_v1  ;;  %v332_v43 = vmul.f32 %v324_v62, %v594_v12  ;;  %v333_v8 = vmul.f32 %v325_v28, %v597_v13  ;;  %v334_v29 = vmul.f32 %v326_v32, %v599_v14 }
  0x51   :  { %v320_v47 = vsel %vm319_vm14, %v592_v11, %v318_v26  ;;  %v335_v48 = vmul.f32 %v327_v37, %v601_v15  ;;  %v336_v10 = vmul.f32 %v328_v57, %v604_v16  ;;  %v337_v30 = vmul.f32 %v329_v38, %v606_v17 }
  0x52   :  { %v323_v49 = vsel %vm321_vm15, %v322_v33, %v320_v47  ;;  %v338_v12 = vmul.f32 %v330_v42, %v608_v18  ;;  %v358_v13 = vmul.f32 %v342_v34, %v332_v43  ;;  %v359_v14 = vmul.f32 %v343_v35, %v333_v8 }
  0x53   :  { %v331_v52 = vsub.f32 1.0, %v323_v49  ;;  %v360_v15 = vmul.f32 %v344_v39, %v334_v29  ;;  %v361_v16 = vmul.f32 %v345_v40, %v335_v48  ;;  %v362_v17 = vmul.f32 %v346_v44, %v336_v10  ;;  %v366_v39 = vld [vmem:[#allocation4] sm:$0xff] }
  0x54   :  { %v363_v11 = vmul.f32 %v347_v45, %v337_v30  ;;  %v364_v18 = vmul.f32 %v348_v50, %v338_v12  ;;  %v376_v33 = vrot.slane %v359_v14, 6  ;;  %vm382_vm0 = vcmask 1041408  }
  0x55   :  { %v339_v34 = vmul.f32 %v331_v52, %v611_v19  ;;  %v377_v35 = vrot.slane %v360_v15, 4  ;;  %v378_v54 = vrot.slane %v361_v16, 2  ;;  %vm384_vm1 = vcmask 1045508  }
  0x56   :  { %v379_v23 = vrot.slane %v363_v11, 6  ;;  %v383_v55 = vsel %vm382_vm0, %v358_v13, %v376_v33  ;;  %vm386_vm2 = vcmask 1043456   ;;  %v380_v44 = vrot.slane %v364_v18, 4 }
  0x57   :  { %v365_v40 = vmul.f32 %v349_v56, %v339_v34  ;;  %v385_v45 = vsel %vm384_vm1, %v377_v35, %v378_v54 }
  0x58   :  { %v387_v27 = vsel %vm386_vm2, %v383_v55, %v385_v45  ;;  %v388_v50 = vsel %vm382_vm0, %v362_v17, %v379_v23 }
  0x59   :  { %v381_v58 = vrot.slane %v365_v40, 2  ;;  %v393_v60 = vadd.f32 %v387_v27, %v366_v39 }
  0x5b   :  { %v389_v19 = vsel %vm384_vm1, %v380_v44, %v381_v58  ;;  %395 = vst [vmem:[#allocation9] sm:$0xff] %v393_v60 }
  0x5c   :  { %v390_v31 = vsel %vm386_vm2, %v388_v50, %v389_v19 }
  0x5d   :  { %v394_v22 = vadd.f32 %v390_v31, %v367_v61 }
  0x5f   :  { %396 = vst [vmem:[#allocation9 + $0x8] sm:$0xff] %v394_v22 }
  0x60   :  { %407 = dma.vmem_to_hbm [thread:$0]  %s403_s2, 256, %s405_s26, [#allocation6]  }
  0x61   :  { %542 = dma.done.wait [#allocation6], 256  }
  0x62   :  { %543 = vsyncadd [#allocation6], 4294967040 }
  0x63   :  { %412 = vsyncpa [#allocation5], 1 }
  0x64   :  { %413 = vsyncpa [#allocation8], 1 }
  0x65   :  { %414 = vsyncpa [#allocation6], 1 }

</bundles_post_ra>
